<compile_context>
chip_gen: v5e
topology: v5e:2x2
jax: 0.10.0
libtpu: 0.0.40
codegen_flags: <defaults>
</compile_context>

<pallas_src>
import jax
import jax.numpy as jnp
from jax import lax
from jax.experimental import pallas as pl
from jax.experimental.pallas import tpu as pltpu


def self_attention_kernel(x_ref, w1t_ref, w2_ref, out_ref):
    # x_ref:   (Bt, S, D_in)  batch-chunk of inputs (compute dtype, e.g. bf16)
    # w1t_ref: (D_in, H)      layer1 weight, pre-transposed in the wrapper
    # w2_ref:  (O, H)         layer2 weight, PyTorch layout (contracted on H)
    # out_ref: (Bt, O, S)     softmax(logits) in the permuted layout
    bt, s, d_in = x_ref.shape
    o, h_dim = w2_ref.shape

    # ---- layer1 + tanh on the whole batch chunk at once ------------------
    # Flatten (Bt, S) -> rows so the MXU sees Bt*S rows instead of S.
    xf = x_ref[...].reshape(bt * s, d_in)
    h = jnp.tanh(
        jnp.dot(xf, w1t_ref[...], preferred_element_type=jnp.float32)
    )                                                    # (Bt*S, H) f32

    # ---- layer2 producing logits directly in (Bt, O, S) ------------------
    # Batched dot_general contracting the hidden dim of both operands; the
    # result layout IS the permute(0, 2, 1) result, so no transpose needed.
    h3 = h.reshape(bt, s, h_dim).astype(w2_ref.dtype)    # (Bt, S, H)
    w2b = jnp.broadcast_to(w2_ref[...], (bt, o, h_dim))  # (Bt, O, H), tiny
    logits = lax.dot_general(
        w2b, h3,
        dimension_numbers=(((2,), (2,)), ((0,), (0,))),
        preferred_element_type=jnp.float32,
    )                                                    # (Bt, O, S) f32

    # ---- numerically stable softmax over the sequence axis (lanes) -------
    m = jnp.max(logits, axis=-1, keepdims=True)
    e = jnp.exp(logits - m)
    denom = jnp.sum(e, axis=-1, keepdims=True)
    out = e * pl.reciprocal(denom, approx=True)          # EUP slot, ~free

    out_ref[...] = out.astype(out_ref.dtype)


def _pick_batch_tile(B, S, D_in, O, *, in_itemsize, vmem_budget=8 << 20):
    """Largest divisor of B that (a) keeps double-buffered blocks under the
    VMEM budget and (b) defaults to two chunks (megacore) when B is even."""
    per_b = 2 * (S * D_in * in_itemsize) + 2 * (O * S * 4)  # in + out, x2 buf
    cap = max(1, vmem_budget // max(per_b, 1))
    desired = B // 2 if (B >= 2 and B % 2 == 0) else B
    bt = max(1, min(desired, cap))
    while B % bt:  # snap to a divisor of B
        bt -= 1
    return bt


def self_attention(x, w1, w2, *, batch_tile=None, compute_dtype=jnp.bfloat16):
    """x: (B, S, D_in), w1: (H, D_in), w2: (O, H) -> (B, O, S) float32.

    Weights follow the PyTorch nn.Linear (out_features, in_features) layout.
    """
    B, S, D_in = x.shape
    H, _ = w1.shape
    O, _ = w2.shape

    if batch_tile is None:
        batch_tile = _pick_batch_tile(
            B, S, D_in, O, in_itemsize=jnp.dtype(compute_dtype).itemsize)
    assert B % batch_tile == 0, (B, batch_tile)
    num_chunks = B // batch_tile

    # One-time wrapper-side layout / dtype prep (plain XLA ops, not per-step):
    xc = x.astype(compute_dtype)
    w1t = jnp.transpose(w1).astype(compute_dtype)   # (D_in, H)
    w2c = w2.astype(compute_dtype)                  # (O, H)

    return pl.pallas_call(
        self_attention_kernel,
        out_shape=jax.ShapeDtypeStruct((B, O, S), jnp.float32),
        grid_spec=pltpu.PrefetchScalarGridSpec(
            num_scalar_prefetch=0,
            grid=(num_chunks,),
            in_specs=[
                pl.BlockSpec((batch_tile, S, D_in), lambda c: (c, 0, 0)),
                pl.BlockSpec((D_in, H), lambda c: (0, 0)),
                pl.BlockSpec((O, H), lambda c: (0, 0)),
            ],
            out_specs=pl.BlockSpec((batch_tile, O, S), lambda c: (c, 0, 0)),
        ),
        compiler_params=pltpu.CompilerParams(
            dimension_semantics=("parallel",),
        ),
    )(xc, w1t, w2c)


def self_attention_ref(x, w1, w2):
    """Pure-JAX f32 reference mirroring the PyTorch forward."""
    h = jnp.tanh(jnp.einsum("bsd,hd->bsh", x, w1))
    s = jnp.einsum("bsh,oh->bso", h, w2)
    logits = jnp.transpose(s, (0, 2, 1))            # (B, O, S)
    return jax.nn.softmax(logits, axis=2)


if __name__ == "__main__":
    # Small shapes consistent with the module:
    #   batch=2, seq=8, input_size=32, hidden_size=32, output_size=4
    B, S, D_in, H, O = 2, 8, 32, 32, 4

    key = jax.random.PRNGKey(0)
    kx, k1, k2 = jax.random.split(key, 3)

    x = jax.random.normal(kx, (B, S, D_in), dtype=jnp.float32)
    # Deterministic synthetic parameters (nn.Linear weight shapes: (out, in))
    w1 = jax.random.normal(k1, (H, D_in), dtype=jnp.float32) * 0.1
    w2 = jax.random.normal(k2, (O, H), dtype=jnp.float32) * 0.1

    out = self_attention(x, w1, w2)
    out = jax.block_until_ready(out)

    ref = self_attention_ref(x, w1, w2)
    assert out.shape == (B, O, S), out.shape
    # bf16 matmul inputs + approx reciprocal -> loosened tolerance.
    assert jnp.allclose(out, ref, atol=1e-2, rtol=1e-2), (
        float(jnp.max(jnp.abs(out - ref)))
    )
    # softmax rows sum to ~1 (approx reciprocal)
    assert jnp.allclose(jnp.sum(out, axis=2), 1.0, atol=5e-3)

    print("KERNEL_OK")
</pallas_src>

<mosaic_0001>
module attributes {stable_mosaic.version = 11 : i64} {
  func.func @self_attention_kernel(%arg0: i32, %arg1: memref<1x8x32xbf16, #tpu.memory_space<vmem>>, %arg2: memref<32x32xbf16, #tpu.memory_space<vmem>>, %arg3: memref<4x32xbf16, #tpu.memory_space<vmem>>, %arg4: memref<1x4x8xf32, #tpu.memory_space<vmem>>) attributes {dimension_semantics = [#tpu.dimension_semantics<parallel>], iteration_bounds = array<i64: 2>, scalar_prefetch = 0 : i64, scratch_operands = 0 : i64, tpu.core_type = #tpu.core_type<tc>, window_params = [{transform_indices = @transform_0, window_bounds = array<i64: 1, 8, 32>}, {pipeline_mode = #tpu.pipeline_mode<synchronous>, transform_indices = @transform_1, window_bounds = array<i64: 32, 32>}, {pipeline_mode = #tpu.pipeline_mode<synchronous>, transform_indices = @transform_2, window_bounds = array<i64: 4, 32>}, {transform_indices = @transform_3, window_bounds = array<i64: 1, 4, 8>}]} {
    %c0 = arith.constant 0 : index
    %c0_0 = arith.constant 0 : index
    %c0_1 = arith.constant 0 : index
    %0 = vector.load %arg1[%c0, %c0_0, %c0_1] : memref<1x8x32xbf16, #tpu.memory_space<vmem>>, vector<1x8x32xbf16>
    %1 = vector.shape_cast %0 : vector<1x8x32xbf16> to vector<8x32xbf16>
    %c0_2 = arith.constant 0 : index
    %c0_3 = arith.constant 0 : index
    %2 = vector.load %arg2[%c0_2, %c0_3] : memref<32x32xbf16, #tpu.memory_space<vmem>>, vector<32x32xbf16>
    %cst = arith.constant dense<0.000000e+00> : vector<8x32xf32>
    %3 = tpu.matmul %1, %2, %cst {dimension_numbers = #tpu.dot_dimension_numbers<[1], [0], [0], [1], [0, 0, 1, 1], [], []>} : vector<8x32xbf16>, vector<32x32xbf16>, vector<8x32xf32> -> vector<8x32xf32>
    %4 = math.tanh %3 : vector<8x32xf32>
    %5 = vector.shape_cast %4 : vector<8x32xf32> to vector<1x8x32xf32>
    %6 = arith.truncf %5 : vector<1x8x32xf32> to vector<1x8x32xbf16>
    %c0_4 = arith.constant 0 : index
    %c0_5 = arith.constant 0 : index
    %7 = vector.load %arg3[%c0_4, %c0_5] : memref<4x32xbf16, #tpu.memory_space<vmem>>, vector<4x32xbf16>
    %8 = vector.shape_cast %7 : vector<4x32xbf16> to vector<1x4x32xbf16>
    %cst_6 = arith.constant dense<0.000000e+00> : vector<1x4x8xf32>
    %9 = tpu.matmul %8, %6, %cst_6 {dimension_numbers = #tpu.dot_dimension_numbers<[2], [2], [1], [1], [0, 0, 0, 1, 1, 1], [0], [0]>} : vector<1x4x32xbf16>, vector<1x8x32xbf16>, vector<1x4x8xf32> -> vector<1x4x8xf32>
    %cst_7 = arith.constant dense<0xFF800000> : vector<1x4xf32>
    %10 = vector.multi_reduction <maximumf>, %9, %cst_7 [2] : vector<1x4x8xf32> to vector<1x4xf32>
    %11 = vector.shape_cast %10 : vector<1x4xf32> to vector<1x4x1xf32>
    %12 = vector.broadcast %11 : vector<1x4x1xf32> to vector<1x4x8xf32>
    %13 = arith.subf %9, %12 : vector<1x4x8xf32>
    %14 = math.exp %13 : vector<1x4x8xf32>
    %cst_8 = arith.constant dense<0.000000e+00> : vector<1x4xf32>
    %15 = vector.multi_reduction <add>, %14, %cst_8 [2] : vector<1x4x8xf32> to vector<1x4xf32>
    %16 = vector.shape_cast %15 : vector<1x4xf32> to vector<1x4x1xf32>
    %17 = tpu.reciprocal %16 {approx = true} : vector<1x4x1xf32> -> vector<1x4x1xf32>
    %18 = vector.broadcast %17 : vector<1x4x1xf32> to vector<1x4x8xf32>
    %19 = arith.mulf %14, %18 : vector<1x4x8xf32>
    %c0_9 = arith.constant 0 : index
    %c0_10 = arith.constant 0 : index
    %c0_11 = arith.constant 0 : index
    %20 = vector.load %arg4[%c0_9, %c0_10, %c0_11] : memref<1x4x8xf32, #tpu.memory_space<vmem>>, vector<1x4x8xf32>
    tpu.vector_store %arg4[%c0_9, %c0_10, %c0_11], %19 {strides = array<i32>} : memref<1x4x8xf32, #tpu.memory_space<vmem>>, vector<1x4x8xf32>,
    return
  }
  func.func @transform_0(%arg0: i32) -> (i32, i32, i32) {
    %c0_i32 = arith.constant 0 : i32
    %c0_i32_0 = arith.constant 0 : i32
    %c0_i32_1 = arith.constant 0 : i32
    return %arg0, %c0_i32, %c0_i32_0 : i32, i32, i32
  }
  func.func @transform_1(%arg0: i32) -> (i32, i32) {
    %c0_i32 = arith.constant 0 : i32
    %c0_i32_0 = arith.constant 0 : i32
    %c0_i32_1 = arith.constant 0 : i32
    return %c0_i32, %c0_i32_0 : i32, i32
  }
  func.func @transform_2(%arg0: i32) -> (i32, i32) {
    %c0_i32 = arith.constant 0 : i32
    %c0_i32_0 = arith.constant 0 : i32
    %c0_i32_1 = arith.constant 0 : i32
    return %c0_i32, %c0_i32_0 : i32, i32
  }
  func.func @transform_3(%arg0: i32) -> (i32, i32, i32) {
    %c0_i32 = arith.constant 0 : i32
    %c0_i32_0 = arith.constant 0 : i32
    %c0_i32_1 = arith.constant 0 : i32
    return %arg0, %c0_i32, %c0_i32_0 : i32, i32, i32
  }
}

</mosaic_0001>

<bundles_post_ra>
// kernel: tpu_custom_call.1
= control target key start
LH: loop header
LB: loop body
LE: loop exit
PB: predicated region body
PF: predicated region fallthrough
CT: control target
= control target key end

     0   :  { %8 = vsyncpa [#allocation3], 0  ;;  %s835_s0 = inlined_call_operand.hbm [shape: bf16[2,8,32], index: 0, kind: input, shape index: {}]   ;;  %s836_s1 = inlined_call_operand.hbm [shape: bf16[32,32], index: 1, kind: input, shape index: {}]   ;;  %s837_s2 = inlined_call_operand.hbm [shape: bf16[4,32], index: 2, kind: input, shape index: {}]   ;;  %s838_s3 = inlined_call_operand.hbm [shape: f32[2,4,8], index: 3, kind: output, shape index: {}]  }
   0x1   :  { %10 = vsyncpa [#allocation3 + $0x1], 0 }
   0x2   :  { %11 = vsyncpa [#allocation6], 0 }
   0x3   :  { %12 = vsyncpa [#allocation4], 0 }
   0x4   :  { %14 = vsyncpa [#allocation4 + $0x1], 0  ;;  %s683_s12 = smov 0   ;;  %s685_s13 = smov 0  }
   0x5   :  { %s687_s14 = smov 0   ;;  %s689_s15 = smov 0  }
   0x6 LB: > { %s130_s18 = sshll.u32 %s836_s1, 4  ;;  %s707_s19 = sadd.s32 4294967295, %s657_s15   ;;  %s657_s15 = sphi %s689_s15, %s849_s15   ;;  %s653_s14 = sphi %s687_s14, %s848_s14   ;;  %s649_s13 = sphi %s685_s13, %s847_s13   ;;  %s645_s12 = sphi %s683_s12, %s846_s12   ;;  %s131_s18 = int_to_ptr.hbm [resolvable:$true] %s130_s18 }
   0x7   : > { %p395_p0 = scmp.ge.s32.totalorder %s657_s15, 1  ;;  %p41_p1 = scmp.eq.s32.totalorder %s707_s19, 0 }
   0x8   : > { %p119_p2 = scmp.lt.s32.totalorder %s657_s15, 3  ;;  %s659_s21 = smov [#allocation5]  }
   0x9   : > { %s132_s22 = sshll.u32 %s659_s21, 4  ;;  %s145_s25 = sshll.u32 %s837_s2, 4  ;;  %s133_s22 = int_to_ptr.vmem [resolvable:$true] %s132_s22  ;;  %s146_s25 = int_to_ptr.hbm [resolvable:$true] %s145_s25 }
   0xa   : > { %p712_p3 = pnand %p395_p0, %p119_p2  ;;  %s660_s26 = smov [#allocation7]  }
   0xb   : > { %s147_s27 = sshll.u32 %s660_s26, 4  ;;  %s661_s28 = smov 64   ;;  %s148_s27 = int_to_ptr.vmem [resolvable:$true] %s147_s27 }
   0xc   : > { %p434_p4 = pneg %p712_p3  ;;  %s662_s29 = smov 4  }
   0xd   : > { %s394_s30 = sadd.s32 4294967294, %s657_s15   ;;  %s726_s4 = sadd.s32 1, %s657_s15  }
   0xe   : > { %p435_p6 = pnand %p434_p4, %p41_p1  ;;  %s24_s5 = ssub.s32 %s657_s15, %s726_s4 }
   0xf   : > { %s27_s6 = sadd.s32 1, %s653_s14  ;;  %p25_p7 = scmp.eq.s32.totalorder %s24_s5, 0 }
  0x10   : > { %437 = dma.hbm_to_vmem [thread:$0]  (!%p435_p6), %s131_s18, 256, %s133_s22, [#allocation6], %s661_s28, %s661_s28, %s662_s29  }
  0x11   : > { %440 = dma.hbm_to_vmem [thread:$0]  (!%p435_p6), %s146_s25, 32, %s148_s27, [#allocation6]  }
  0x12   : > { %p34_p8 = scmp.ne.s32.totalorder %s653_s14, %s649_s13  ;;  %p35_p9 = scmp.eq.s32.totalorder %s657_s15, 0 }
  0x13   : > { %p40_p10 = scmp.ne.s32.totalorder %s649_s13, %s645_s12  ;;  %p106_p13 = scmp.eq.s32.totalorder %s707_s19, 1 }
  0x14   : > { %s737_s7 = scalar_select %p25_p7, %s653_s14, %s27_s6  }
  0x15   : > { %p739_p11 = por %p35_p9, %p34_p8  ;;  %p745_p12 = por %p41_p1, %p40_p10 }
  0x16   : > { %p112_p0 = scmp.eq.s32.totalorder %s394_s30, 1  ;;  %p451_p2 = scmp.lt.s32.totalorder %s657_s15, 2 }
  0x17   : > { %s158_s10 = sand.u32 1, %s653_s14   ;;  %p752_p4 = por %p106_p13, %p34_p8 }
  0x18   : > { %p756_p6 = por %p112_p0, %p40_p10  ;;  %s399_s17 = sshll.u32 %s158_s10, 2 }
  0x19   : > { %s400_s18 = sshll.u32 %s657_s15, 2  ;;  %s162_s24 = scalar_lea.vmem [#allocation2], %s399_s17 }
  0x1a   : > { %s166_s23 = scalar_lea.hbm %s835_s0, %s400_s18  ;;  %s170_s25 = sshll.u32 %s162_s24, 4  ;;  %s171_s25 = int_to_ptr.vmem [resolvable:$true] %s170_s25 }
  0x1b   : > { %s168_s26 = sshll.u32 %s166_s23, 4  ;;  %p766_p7 = pnand %p451_p2, %p739_p11  ;;  %s169_s26 = int_to_ptr.hbm [resolvable:$true] %s168_s26 }
  0x1c   : > { %s159_s28 = scalar_lea.sflag [#allocation3], %s158_s10  ;;  %s557_s29 = sshra.s32 %s169_s26, 4  ;;  %s558_s29 = int_to_ptr.hbm [resolvable:$true] %s557_s29 }
  0x1d   : > { %s559_s30 = scalar_lea.hbm %s558_s29, 4  ;;  %p561_p9 = pneg %p766_p7 }
  0x1e   : > { %p560_p8 = scmp.ne.s32.totalorder %s558_s29, %s559_s30  ;;  %s564_s17 = scalar_lea.hbm %s835_s0, 8 }
  0x1f   : > { %p565_p11 = scmp.lt.s32.totalorder %s558_s29, %s835_s0  ;;  %p566_p0 = scmp.lt.s32.totalorder %s564_s17, %s559_s30 }
  0x20   : > { %p562_p10 = pnand %p561_p9, %p560_p8 }
  0x21   : > { %p567_p2 = por %p566_p0, %p565_p11 }
  0x22   : > { %p563_p13 = pneg %p562_p10 }
  0x24   : > { %p568_p5 = pnand %p567_p2, %p563_p13 }
  0x26   : > { %571 = shalt.err (!%p568_p5)
}
  0x27   : > { %444 = dma.hbm_to_vmem [thread:$0]  (!%p766_p7), %s169_s26, 64, %s171_s25, %s159_s28  }
  0x28   : > { %179 = sbr.rel (%p712_p3) target bundleno = 582 (0x246), region = 32  ;;  %s783_s10 = sand.u32 (!%p712_p3), 1, %s649_s13  }
  0x29   : > { %s402_s21 = sshll.u32 (!%p712_p3), %s783_s10, 2  ;;  %s182_s22 = scalar_lea.sflag (!%p712_p3), [#allocation3], %s783_s10 }
  0x2a   : > { %s185_s23 = scalar_lea.vmem (!%p712_p3), [#allocation2], %s402_s21 }
  0x2d   : > { %632 = dma.done.wait (%p745_p12), %s182_s22, 64  }
  0x2e   : > { %634 = vsyncadd (%p745_p12), %s182_s22, 4294967232 }
  0x2f   : > { %636 = dma.done.wait (%p41_p1), [#allocation6], 288  }
  0x30   : > { %638 = vsyncadd (%p41_p1), [#allocation6], 4294967008  ;;  %v421_v0 = vld [vmem:[#allocation5 + $0x8] sm:$0xff]  ;;  %v420_v1 = vld [vmem:[#allocation5] sm:$0xff]  ;;  %vm237_vm0 = vcmask 261120   ;;  %vm276_vm1 = vcmask 60416  }
  0x31   : > { %247 = vmatpush.bf16.msra.mxu0 %v421_v0  ;;  %v220_v2 = vld [vmem:[%s185_s23] sm:$0xf]  ;;  %v256_v8 = vld [vmem:[#allocation7] sm:$0x3]  ;;  %s417_s20 = sshll.u32 %s707_s19, 2  ;;  %s218_s26 = scalar_lea.vmem [#allocation8], %s402_s21 }
  0x32   : > { %s300_s25 = scalar_lea.hbm %s838_s3, %s417_s20  ;;  %s302_s27 = sshll.u32 %s218_s26, 4  ;;  %s303_s27 = int_to_ptr.vmem [resolvable:$true] %s302_s27 }
  0x33   : > { %s304_s28 = sshll.u32 %s300_s25, 4  ;;  %s290_s29 = scalar_lea.sflag [#allocation4], %s783_s10  ;;  %s305_s28 = int_to_ptr.hbm [resolvable:$true] %s304_s28 }
  0x34   : > { %s601_s30 = sshra.s32 %s305_s28, 4  ;;  %s607_s17 = scalar_lea.hbm %s838_s3, 8  ;;  %s602_s30 = int_to_ptr.hbm [resolvable:$true] %s601_s30 }
  0x35   : > { %248 = vmatpush.bf16.msra.mxu0 %v420_v1  ;;  %s603_s19 = scalar_lea.hbm %s602_s30, 4  ;;  %p608_p12 = scmp.lt.s32.totalorder %s602_s30, %s838_s3 }
  0x36   : > { %p604_p1 = scmp.ne.s32.totalorder %s602_s30, %s603_s19  ;;  %p609_p7 = scmp.lt.s32.totalorder %s607_s17, %s603_s19 }
  0x38   : > { %414 = vmatmul.msk.bf16.vlgmr.msra.gmra.mxu0 %vm237_vm0, %v220_v2  ;;  %p605_p3 = pnand %p604_p1, %p752_p4  ;;  %p610_p8 = por %p609_p7, %p608_p12 }
  0x3a   : > { %p606_p5 = pneg %p605_p3 }
  0x3c   : > { %p611_p9 = pnand %p610_p8, %p606_p5 }
  0xb5   : > { %v250_v3 = vpop.f32.mrf.mxu0 }
  0xb6   : > { %491 = vtanh.f32 %v250_v3 }
  0xbc   : > { %v492_v4 = vpop.eup %491 }
  0xbd   : > { %v252_v5 = vpop.f32.mrf.mxu0  ;;  %v255_v6 = vpack.c.bf16 %v492_v4, %v492_v4 }
  0xbf   : > { %v261_v7 = vsel %vm237_vm0, %v255_v6, 0 }
  0xc0   : > { %270 = vmatpush.bf16.xpose.msra.mxu1 %v261_v7 }
  0xc7   : > { %415 = vmatmul.msk.bf16.vlgmr.msra.gmra.mxu1 %vm237_vm0, %v256_v8 }
 0x144   : > { %v272_v9 = vpop.f32.mrf.mxu1 }
 0x145   : > { %v277_v10 = vsel %vm276_vm1, %v272_v9, -inf }
 0x146   : > { %278 = vmax.xlane.f32.xlu0 %v277_v10 }
 0x14c   : > { %v274_v11 = vpop.f32.mrf.mxu1 }
 0x1b9   : > { %v279_v12 = vpop.xlane.xlu0 %278 }
 0x1ba   : > { %v280_v13 = vsub.f32 %v272_v9, %v279_v12 }
 0x1bc   : > { %v281_v14 = vmul.f32 1.442695, %v280_v13 }
 0x1be   : > { %493 = vpow2.f32 %v281_v14 }
 0x1c4   : > { %v494_v15 = vpop.eup %493 }
 0x1c5   : > { %v283_v16 = vsel %vm276_vm1, %v494_v15, 0.0 }
 0x1c6   : > { %284 = vadd.xlane.f32.xlu0 %v283_v16 }
 0x239   : > { %v285_v17 = vpop.xlane.xlu0 %284 }
 0x23a   : > { %495 = vrcp.f32 %v285_v17 }
 0x240   : > { %v496_v18 = vpop.eup %495 }
 0x241   : > { %v287_v19 = vmul.f32 %v496_v18, %v494_v15 }
 0x243   : > { %288 = vst.msk [vmem:[%s218_s26] sm:$0xf] %vm276_vm1, %v287_v19 }
 0x244   : > { %614 = shalt.err (!%p611_p9)
}
 0x245   : > { %432 = dma.vmem_to_hbm [thread:$0]  (%p752_p4), %s303_s27, 64, %s305_s28, %s290_s29  }
 0x246 PF: > { %s316_s10 = sand.u32 1, %s645_s12   ;;  %p845_p10 = scmp.ge.s32.totalorder %s657_s15, 2 }
 0x247   : > { %s317_s21 = scalar_lea.sflag [#allocation4], %s316_s10 }
 0x248   : > { %p446_p13 = pnand %p845_p10, %p756_p6 }
 0x24a   : > { %p447_p11 = pneg %p446_p13 }
 0x24c   : > { %640 = dma.done.wait (%p447_p11), %s317_s21, 64  }
 0x24d   : > { %642 = vsyncadd (%p447_p11), %s317_s21, 4294967232  ;;  %p17_p0 = scmp.ge.s32.totalorder %s726_s4, 4   ;;  %s846_s12 = smov %s649_s13 }
 0x24e   : > { %s847_s13 = smov %s653_s14  ;;  %s848_s14 = smov %s737_s7 }
 0x24f   : > { %s849_s15 = smov %s726_s4  ;;  %19 = sbr.rel (!%p17_p0) target bundleno = 6 (0x6), region = 85 }
 0x254   :  { %323 = vsyncpa [#allocation3], 1 }
 0x255   :  { %325 = vsyncpa [#allocation3 + $0x1], 1 }
 0x256   :  { %326 = vsyncpa [#allocation6], 1 }
 0x257   :  { %327 = vsyncpa [#allocation4], 1 }
 0x258   :  { %329 = vsyncpa [#allocation4 + $0x1], 1 }

</bundles_post_ra>
